<compile_context>
chip_gen: v7x
topology: tpu7x:2x2x1
jax: 0.10.0
libtpu: 0.0.40
codegen_flags: <defaults>
</compile_context>

<pallas_src>
import jax
import jax.numpy as jnp
from jax.experimental import pallas as pl
from jax.experimental.pallas import tpu as pltpu

_LANE = 128
# ~4 MiB tiles: input + output, double-buffered -> <= 16 MiB of VMEM in flight.
# Fits v5e's small default scoped limit (once raised), v6e's 128 MiB, and
# v7x's 64 MiB physical VMEM with plenty of headroom.
_TARGET_TILE_BYTES = 4 * 1024 * 1024
_VMEM_LIMIT_BYTES = 32 << 20


def _identity_kernel(x_ref, o_ref):
    # Pure VMEM tile copy — the op is entirely HBM-bandwidth bound.
    o_ref[...] = x_ref[...]


def _pallas_copy_2d(x2: jax.Array, tile_rows: int) -> jax.Array:
    rows, cols = x2.shape
    grid = (pl.cdiv(rows, tile_rows),)  # ragged last block: writes are masked
    return pl.pallas_call(
        _identity_kernel,
        out_shape=jax.ShapeDtypeStruct((rows, cols), x2.dtype),
        grid=grid,
        in_specs=[pl.BlockSpec((tile_rows, cols), lambda i: (i, 0))],
        out_specs=pl.BlockSpec((tile_rows, cols), lambda i: (i, 0)),
        # Let XLA reuse the input buffer for the output whenever the input is
        # not otherwise live (typical for an intermediate activation in a jit).
        # If the input must stay live (as in the demo below), XLA inserts a
        # protective copy — still bit-exact.
        input_output_aliases={0: 0},
        compiler_params=pltpu.CompilerParams(
            dimension_semantics=("parallel",),
            vmem_limit_bytes=_VMEM_LIMIT_BYTES,
        ),
    )(x2)


def _pick_lane_cols(total: int) -> int:
    # Largest lane-dense width (multiple of 128) that divides the flat size,
    # so stores are full-width vst (no masked 16-lane partial stores).
    for cols in (2048, 1024, 512, 256, _LANE):
        if total % cols == 0:
            return cols
    return 0


@jax.jit
def identity_pallas(x: jax.Array) -> jax.Array:
    """Identity forward pass.

    Note: the mathematically optimal Identity is `return x` (zero HBM traffic);
    the Pallas path is kept to demonstrate the op as a kernel and is tuned to
    sit near the HBM-copy roofline: lane-dense layout, multi-MiB tiles, no
    pad/slice extra passes, and buffer aliasing.
    """
    orig_shape = x.shape
    total = x.size

    if total == 0:
        return x  # nothing to copy

    cols = _pick_lane_cols(total)
    if cols == 0:
        # Flat size not a multiple of 128: copy the whole array as one full
        # block (block_shape == full dims needs no 8x128 alignment).
        # TODO(synk): tile ragged flat sizes if they ever get VMEM-large.
        x2 = x.reshape(1, total)
        out2 = _pallas_copy_2d(x2, tile_rows=1)
        return out2.reshape(orig_shape)

    rows = total // cols
    itemsize = jnp.dtype(x.dtype).itemsize
    # Multi-MiB row tiles (multiple of 8 sublanes), capped at the full extent.
    tile_rows = max(8, (_TARGET_TILE_BYTES // (cols * itemsize)) // 8 * 8)
    tile_rows = min(tile_rows, rows)

    x2 = x.reshape(rows, cols)  # lane-dense 2D view, no data movement
    out2 = _pallas_copy_2d(x2, tile_rows)
    return out2.reshape(orig_shape)


if __name__ == "__main__":
    key = jax.random.PRNGKey(0)
    # NCHW input consistent with a conv-style module: batch=2, channels=4, 16x16 spatial.
    x = jax.random.normal(key, (2, 4, 16, 16), dtype=jnp.float32)

    y = identity_pallas(x)
    jax.block_until_ready(y)

    assert y.shape == x.shape
    assert y.dtype == x.dtype
    assert bool(jnp.all(y == x))

    print("KERNEL_OK")
</pallas_src>

<mosaic_0001>
module attributes {stable_mosaic.version = 11 : i64} {
  func.func @_identity_kernel(%arg0: i32, %arg1: memref<1x2048xf32, #tpu.memory_space<vmem>>, %arg2: memref<1x2048xf32, #tpu.memory_space<vmem>>) attributes {dimension_semantics = [#tpu.dimension_semantics<parallel>], iteration_bounds = array<i64: 1>, scalar_prefetch = 0 : i64, scratch_operands = 0 : i64, tpu.core_type = #tpu.core_type<tc>, window_params = [{transform_indices = @transform_0, window_bounds = array<i64: 1, 2048>}, {transform_indices = @transform_1, window_bounds = array<i64: 1, 2048>}]} {
    %c0 = arith.constant 0 : index
    %c0_0 = arith.constant 0 : index
    %0 = vector.load %arg1[%c0, %c0_0] : memref<1x2048xf32, #tpu.memory_space<vmem>>, vector<1x2048xf32>
    %c0_1 = arith.constant 0 : index
    %c0_2 = arith.constant 0 : index
    %1 = vector.load %arg2[%c0_1, %c0_2] : memref<1x2048xf32, #tpu.memory_space<vmem>>, vector<1x2048xf32>
    tpu.vector_store %arg2[%c0_1, %c0_2], %0 {strides = array<i32>} : memref<1x2048xf32, #tpu.memory_space<vmem>>, vector<1x2048xf32>,
    return
  }
  func.func @transform_0(%arg0: i32) -> (i32, i32) {
    %c0_i32 = arith.constant 0 : i32
    %c0_i32_0 = arith.constant 0 : i32
    return %arg0, %c0_i32 : i32, i32
  }
  func.func @transform_1(%arg0: i32) -> (i32, i32) {
    %c0_i32 = arith.constant 0 : i32
    %c0_i32_0 = arith.constant 0 : i32
    return %arg0, %c0_i32 : i32, i32
  }
}

</mosaic_0001>

<bundles_post_ra>
// kernel: identity_pallas.1
= control target key start
LH: loop header
LB: loop body
LE: loop exit
PB: predicated region body
PF: predicated region fallthrough
CT: control target
= control target key end

     0   :  { %s38_s0 = inlined_call_operand.vmem [shape: f32[1,2048], index: 0, kind: input, shape index: {}, may-alias: {0,1}]   ;;  %s39_s1 = inlined_call_operand.vmem [shape: f32[1,2048], index: 1, kind: output, shape index: {}, may-alias: {0,1}]  }
   0x1   :  { %v8_v0 = vld [vmem:[%s38_s0] sm:$0xff]  ;;  %v9_v1 = vld [vmem:[%s38_s0 + $0x8] sm:$0xff] }
   0x2   :  { %10 = vst [vmem:[%s39_s1] sm:$0xff] %v8_v0  ;;  %11 = vst [vmem:[%s39_s1 + $0x8] sm:$0xff] %v9_v1 }

</bundles_post_ra>
